<compile_context>
chip_gen: v5e
topology: v5e:2x2
jax: 0.10.0
libtpu: 0.0.40
codegen_flags: <defaults>
</compile_context>

<pallas_src>
import jax
import jax.numpy as jnp
from jax.experimental import pallas as pl
from jax.experimental.pallas import tpu as pltpu

N = 8
C, H, W = 3, 28, 28
IN_F = C * H * W          # 2352
HID = 320
OUT = 10
OUT_PAD = 128             # lane-dense padded output dim


def _mlp_kernel(x_ref, wc_ref, bc_ref, o_ref):
    # x_ref:  (N, IN_F)        f32
    # wc_ref: (IN_F, OUT_PAD)  bf16  (folded fc1∘fc2 weight, zero-padded)
    # bc_ref: (1, OUT_PAD)     f32   (folded bias, zero-padded)
    # o_ref:  (N, OUT_PAD)     f32
    x = x_ref[...].astype(jnp.bfloat16)                      # bf16 MXU path
    y = jnp.dot(x, wc_ref[...], preferred_element_type=jnp.float32)
    o_ref[...] = y + bc_ref[...]


def prepare_params(w1, b1, w2, b2):
    """One-time parameter preparation (kept OFF the per-call hot path):
       - algebraically fold fc1∘fc2 (no activation between them) into a
         single (IN_F, OUT) weight + (OUT,) bias, computed in f32,
       - zero-pad the output dim 10 -> 128 (lane-dense store / matmul),
       - cast the folded weight to bf16 (halves the dominant weight DMA)."""
    w1f = jnp.asarray(w1, jnp.float32)          # (HID, IN_F)  torch layout
    b1f = jnp.asarray(b1, jnp.float32)          # (HID,)
    w2f = jnp.asarray(w2, jnp.float32)          # (OUT, HID)   torch layout
    b2f = jnp.asarray(b2, jnp.float32)          # (OUT,)

    w_comb = w1f.T @ w2f.T                      # (IN_F, OUT)   f32
    b_comb = b1f @ w2f.T + b2f                  # (OUT,)        f32

    wc = jnp.zeros((IN_F, OUT_PAD), jnp.bfloat16)
    wc = wc.at[:, :OUT].set(w_comb.astype(jnp.bfloat16))
    bc = jnp.zeros((1, OUT_PAD), jnp.float32)
    bc = bc.at[0, :OUT].set(b_comb)
    return wc, bc


@jax.jit
def mlp_forward(x_nchw, wc, bc):
    """x_nchw: (N, 3, 28, 28) f32; (wc, bc) from prepare_params."""
    n = x_nchw.shape[0]
    x2d = x_nchw.reshape(n, IN_F)               # same as torch .view(-1, 2352)

    flops = 2 * n * IN_F * OUT_PAD
    bytes_accessed = (n * IN_F * 4              # x (f32)
                      + IN_F * OUT_PAD * 2      # folded weight (bf16)
                      + OUT_PAD * 4             # folded bias
                      + n * OUT_PAD * 4)        # out

    out_pad = pl.pallas_call(
        _mlp_kernel,
        out_shape=jax.ShapeDtypeStruct((n, OUT_PAD), jnp.float32),
        in_specs=[
            pl.BlockSpec((n, IN_F), lambda: (0, 0)),
            pl.BlockSpec((IN_F, OUT_PAD), lambda: (0, 0)),
            pl.BlockSpec((1, OUT_PAD), lambda: (0, 0)),
        ],
        out_specs=pl.BlockSpec((n, OUT_PAD), lambda: (0, 0)),
        cost_estimate=pl.CostEstimate(
            flops=flops, bytes_accessed=bytes_accessed, transcendentals=0),
        compiler_params=pltpu.CompilerParams(),
    )(x2d, wc, bc)

    return out_pad[:, :OUT]                     # drop the lane padding


def init_params(key):
    # Deterministic init mimicking torch.nn.Linear defaults
    # (uniform in [-1/sqrt(fan_in), 1/sqrt(fan_in)]), torch parameter layout.
    k1, k2, k3, k4 = jax.random.split(key, 4)
    bound1 = 1.0 / (IN_F ** 0.5)
    bound2 = 1.0 / (HID ** 0.5)
    w1 = jax.random.uniform(k1, (HID, IN_F), jnp.float32, -bound1, bound1)
    b1 = jax.random.uniform(k2, (HID,), jnp.float32, -bound1, bound1)
    w2 = jax.random.uniform(k3, (OUT, HID), jnp.float32, -bound2, bound2)
    b2 = jax.random.uniform(k4, (OUT,), jnp.float32, -bound2, bound2)
    return w1, b1, w2, b2


if __name__ == "__main__":
    key = jax.random.PRNGKey(0)
    kx, kp = jax.random.split(key)
    x1 = jax.random.normal(kx, (N, C, H, W), dtype=jnp.float32)
    w1, b1, w2, b2 = init_params(kp)

    wc, bc = prepare_params(w1, b1, w2, b2)     # one-time prep, off hot path
    out = mlp_forward(x1, wc, bc)
    out = jax.block_until_ready(out)

    # Correctness check 1: self-consistent (same bf16 rounding as the kernel).
    x2d = x1.reshape(N, IN_F)
    x_q = x2d.astype(jnp.bfloat16).astype(jnp.float32)
    wc_q = wc[:, :OUT].astype(jnp.float32)
    ref_q = x_q @ wc_q + bc[0, :OUT]
    assert out.shape == (N, OUT)
    assert jnp.allclose(out, ref_q, atol=2e-2, rtol=2e-2), float(
        jnp.max(jnp.abs(out - ref_q)))

    # Correctness check 2: against the full-f32 two-layer PyTorch semantics
    # (looser tolerance to absorb bf16 weight/activation rounding).
    ref_f32 = (x2d @ w1.T + b1) @ w2.T + b2
    assert jnp.allclose(out, ref_f32, atol=5e-2, rtol=5e-2), float(
        jnp.max(jnp.abs(out - ref_f32)))

    print("KERNEL_OK")
</pallas_src>

<mosaic_0001>
module attributes {stable_mosaic.version = 11 : i64} {
  func.func @_mlp_kernel(%arg0: memref<8x2352xf32, #tpu.memory_space<vmem>>, %arg1: memref<2352x128xbf16, #tpu.memory_space<vmem>>, %arg2: memref<1x128xf32, #tpu.memory_space<vmem>>, %arg3: memref<8x128xf32, #tpu.memory_space<vmem>>) attributes {dimension_semantics = [], scalar_prefetch = 0 : i64, scratch_operands = 0 : i64, tpu.core_type = #tpu.core_type<tc>} {
    %c0 = arith.constant 0 : index
    %c0_0 = arith.constant 0 : index
    %0 = vector.load %arg0[%c0, %c0_0] : memref<8x2352xf32, #tpu.memory_space<vmem>>, vector<8x2352xf32>
    %1 = arith.truncf %0 : vector<8x2352xf32> to vector<8x2352xbf16>
    %c0_1 = arith.constant 0 : index
    %c0_2 = arith.constant 0 : index
    %2 = vector.load %arg1[%c0_1, %c0_2] : memref<2352x128xbf16, #tpu.memory_space<vmem>>, vector<2352x128xbf16>
    %cst = arith.constant dense<0.000000e+00> : vector<8x128xf32>
    %3 = tpu.matmul %1, %2, %cst {dimension_numbers = #tpu.dot_dimension_numbers<[1], [0], [0], [1], [0, 0, 1, 1], [], []>} : vector<8x2352xbf16>, vector<2352x128xbf16>, vector<8x128xf32> -> vector<8x128xf32>
    %c0_3 = arith.constant 0 : index
    %c0_4 = arith.constant 0 : index
    %4 = vector.load %arg2[%c0_3, %c0_4] : memref<1x128xf32, #tpu.memory_space<vmem>>, vector<1x128xf32>
    %5 = vector.broadcast %4 : vector<1x128xf32> to vector<8x128xf32>
    %6 = arith.addf %3, %5 : vector<8x128xf32>
    %c0_5 = arith.constant 0 : index
    %c0_6 = arith.constant 0 : index
    %7 = vector.load %arg3[%c0_5, %c0_6] : memref<8x128xf32, #tpu.memory_space<vmem>>, vector<8x128xf32>
    tpu.vector_store %arg3[%c0_5, %c0_6], %6 {strides = array<i32>} : memref<8x128xf32, #tpu.memory_space<vmem>>, vector<8x128xf32>,
    return
  }
}

</mosaic_0001>

<bundles_post_ra>
// kernel: mlp_forward.1
= control target key start
LH: loop header
LB: loop body
LE: loop exit
PB: predicated region body
PF: predicated region fallthrough
CT: control target
= control target key end

     0   :  { %s2791_s0 = inlined_call_operand.vmem [shape: f32[8,2352], index: 0, kind: input, shape index: {}]   ;;  %s2792_s1 = inlined_call_operand.vmem [shape: bf16[2352,128], index: 1, kind: input, shape index: {}]   ;;  %s2793_s2 = inlined_call_operand.vmem [shape: f32[1,128], index: 2, kind: input, shape index: {}]   ;;  %s2794_s3 = inlined_call_operand.hbm [shape: f32[8,128], index: 3, kind: output, shape index: {}]  }
   0x1   :  { %v2098_v0 = vld [vmem:[%s2792_s1 + $0x38] sm:$0xff]  ;;  %v2097_v4 = vld [vmem:[%s2792_s1 + $0x30] sm:$0xff]  ;;  %v2096_v8 = vld [vmem:[%s2792_s1 + $0x28] sm:$0xff] }
   0x2   :  { %v2106_v1 = vld [vmem:[%s2792_s1 + $0x78] sm:$0xff]  ;;  %1238 = vmatpush.bf16.msra.mxu0 %v2098_v0  ;;  %v2105_v5 = vld [vmem:[%s2792_s1 + $0x70] sm:$0xff]  ;;  %v2104_v9 = vld [vmem:[%s2792_s1 + $0x68] sm:$0xff] }
   0x3   :  { %v2114_v2 = vld [vmem:[%s2792_s1 + $0xb8] sm:$0xff]  ;;  %1251 = vmatpush.bf16.msra.mxu1 %v2106_v1  ;;  %v2113_v6 = vld [vmem:[%s2792_s1 + $0xb0] sm:$0xff]  ;;  %v2112_v10 = vld [vmem:[%s2792_s1 + $0xa8] sm:$0xff] }
   0x4   :  { %v2122_v3 = vld [vmem:[%s2792_s1 + $0xf8] sm:$0xff]  ;;  %1264 = vmatpush.bf16.msra.mxu2 %v2114_v2  ;;  %v2121_v7 = vld [vmem:[%s2792_s1 + $0xf0] sm:$0xff]  ;;  %v2120_v11 = vld [vmem:[%s2792_s1 + $0xe8] sm:$0xff] }
   0x5   :  { %1277 = vmatpush.bf16.msra.mxu3 %v2122_v3  ;;  %v2095_v12 = vld [vmem:[%s2792_s1 + $0x20] sm:$0xff]  ;;  %v2094_v16 = vld [vmem:[%s2792_s1 + $0x18] sm:$0xff]  ;;  %v2093_v20 = vld [vmem:[%s2792_s1 + $0x10] sm:$0xff] }
   0x6   :  { %1239 = vmatpush.bf16.msra.mxu0 %v2097_v4  ;;  %v2103_v13 = vld [vmem:[%s2792_s1 + $0x60] sm:$0xff]  ;;  %v2102_v17 = vld [vmem:[%s2792_s1 + $0x58] sm:$0xff]  ;;  %v2101_v21 = vld [vmem:[%s2792_s1 + $0x50] sm:$0xff] }
   0x7   :  { %1252 = vmatpush.bf16.msra.mxu1 %v2105_v5  ;;  %v2111_v14 = vld [vmem:[%s2792_s1 + $0xa0] sm:$0xff]  ;;  %v2110_v18 = vld [vmem:[%s2792_s1 + $0x98] sm:$0xff]  ;;  %v2109_v22 = vld [vmem:[%s2792_s1 + $0x90] sm:$0xff] }
   0x8   :  { %1265 = vmatpush.bf16.msra.mxu2 %v2113_v6  ;;  %v2119_v15 = vld [vmem:[%s2792_s1 + $0xe0] sm:$0xff]  ;;  %v2118_v19 = vld [vmem:[%s2792_s1 + $0xd8] sm:$0xff]  ;;  %v2117_v23 = vld [vmem:[%s2792_s1 + $0xd0] sm:$0xff] }
   0x9   :  { %1278 = vmatpush.bf16.msra.mxu3 %v2121_v7 }
   0xa   :  { %1240 = vmatpush.bf16.msra.mxu0 %v2096_v8 }
   0xb   :  { %1253 = vmatpush.bf16.msra.mxu1 %v2104_v9 }
   0xc   :  { %1266 = vmatpush.bf16.msra.mxu2 %v2112_v10 }
   0xd   :  { %1279 = vmatpush.bf16.msra.mxu3 %v2120_v11 }
   0xe   :  { %1241 = vmatpush.bf16.msra.mxu0 %v2095_v12 }
   0xf   :  { %1254 = vmatpush.bf16.msra.mxu1 %v2103_v13 }
  0x10   :  { %1267 = vmatpush.bf16.msra.mxu2 %v2111_v14 }
  0x11   :  { %1280 = vmatpush.bf16.msra.mxu3 %v2119_v15 }
  0x12   :  { %1242 = vmatpush.bf16.msra.mxu0 %v2094_v16 }
  0x13   :  { %1255 = vmatpush.bf16.msra.mxu1 %v2102_v17 }
  0x14   :  { %1268 = vmatpush.bf16.msra.mxu2 %v2110_v18 }
  0x15   :  { %1281 = vmatpush.bf16.msra.mxu3 %v2118_v19 }
  0x16   :  { %8 = vsyncpa [#allocation3], 0  ;;  %1243 = vmatpush.bf16.msra.mxu0 %v2093_v20  ;;  %v2092_v24 = vld [vmem:[%s2792_s1 + $0x8] sm:$0xff]  ;;  %v2091_v28 = vld [vmem:[%s2792_s1] sm:$0xff]  ;;  %vm1234_vm0 = vcmask 392192   ;;  %s1493_s23 = sshll.u32 %s2794_s3, 4  ;;  %s1494_s23 = int_to_ptr.hbm [resolvable:$true] %s1493_s23 }
  0x17   :  { %1256 = vmatpush.bf16.msra.mxu1 %v2101_v21  ;;  %v2100_v25 = vld [vmem:[%s2792_s1 + $0x48] sm:$0xff]  ;;  %v2099_v29 = vld [vmem:[%s2792_s1 + $0x40] sm:$0xff]  ;;  %v2130_v32 = vld [vmem:[%s2792_s1 + $0x138] sm:$0xff] }
  0x18   :  { %1269 = vmatpush.bf16.msra.mxu2 %v2109_v22  ;;  %v2108_v26 = vld [vmem:[%s2792_s1 + $0x88] sm:$0xff]  ;;  %v16_v30 = vld [vmem:[%s2791_s0] sm:$0xff]  ;;  %v18_v33 = vld [vmem:[%s2791_s0 + $0x10] sm:$0xff] }
  0x19   :  { %1282 = vmatpush.bf16.msra.mxu3 %v2117_v23  ;;  %v2116_v27 = vld [vmem:[%s2792_s1 + $0xc8] sm:$0xff]  ;;  %v2107_v31 = vld [vmem:[%s2792_s1 + $0x80] sm:$0xff]  ;;  %v2138_v34 = vld [vmem:[%s2792_s1 + $0x178] sm:$0xff]  ;;  %v35_v38 = vpack.c.bf16 %v16_v30, %v16_v30  ;;  %v37_v40 = vpack.c.bf16 %v18_v33, %v18_v33 }
  0x1a   :  { %1244 = vmatpush.bf16.msra.mxu0 %v2092_v24  ;;  %v2146_v35 = vld [vmem:[%s2792_s1 + $0x1b8] sm:$0xff]  ;;  %v17_v36 = vld [vmem:[%s2791_s0 + $0x8] sm:$0xff]  ;;  %v2115_v37 = vld [vmem:[%s2792_s1 + $0xc0] sm:$0xff] }
  0x1b   :  { %1257 = vmatpush.bf16.msra.mxu1 %v2100_v25  ;;  %v2154_v39 = vld [vmem:[%s2792_s1 + $0x1f8] sm:$0xff]  ;;  %v2129_v42 = vld [vmem:[%s2792_s1 + $0x130] sm:$0xff]  ;;  %v36_v43 = vpack.c.bf16 %v17_v36, %v17_v36  ;;  %v2128_v48 = vld [vmem:[%s2792_s1 + $0x128] sm:$0xff] }
  0x1c   :  { %1270 = vmatpush.bf16.msra.mxu2 %v2108_v26  ;;  %v19_v41 = vld [vmem:[%s2791_s0 + $0x18] sm:$0xff]  ;;  %v2137_v44 = vld [vmem:[%s2792_s1 + $0x170] sm:$0xff]  ;;  %v2136_v49 = vld [vmem:[%s2792_s1 + $0x168] sm:$0xff] }
  0x1d   :  { %1283 = vmatpush.bf16.msra.mxu3 %v2116_v27  ;;  %v2145_v45 = vld [vmem:[%s2792_s1 + $0x1b0] sm:$0xff]  ;;  %v38_v46 = vpack.c.bf16 %v19_v41, %v19_v41  ;;  %v2144_v50 = vld [vmem:[%s2792_s1 + $0x1a8] sm:$0xff]  ;;  %v2127_v52 = vld [vmem:[%s2792_s1 + $0x120] sm:$0xff] }
  0x1e   :  { %1245 = vmatpush.bf16.msra.mxu0 %v2091_v28  ;;  %v2153_v47 = vld [vmem:[%s2792_s1 + $0x1f0] sm:$0xff]  ;;  %v2152_v51 = vld [vmem:[%s2792_s1 + $0x1e8] sm:$0xff]  ;;  %v2135_v53 = vld [vmem:[%s2792_s1 + $0x160] sm:$0xff] }
  0x1f   :  { %1258 = vmatpush.bf16.msra.mxu1 %v2099_v29  ;;  %v2143_v54 = vld [vmem:[%s2792_s1 + $0x1a0] sm:$0xff]  ;;  %v2126_v56 = vld [vmem:[%s2792_s1 + $0x118] sm:$0xff]  ;;  %v2125_v60 = vld [vmem:[%s2792_s1 + $0x110] sm:$0xff] }
  0x20   :  { %1271 = vmatpush.bf16.msra.mxu2 %v2107_v31  ;;  %v2151_v55 = vld [vmem:[%s2792_s1 + $0x1e0] sm:$0xff]  ;;  %v2134_v57 = vld [vmem:[%s2792_s1 + $0x158] sm:$0xff]  ;;  %v2133_v61 = vld [vmem:[%s2792_s1 + $0x150] sm:$0xff] }
  0x21   :  { %1284 = vmatpush.bf16.msra.mxu3 %v2115_v37  ;;  %1246 = vmatmul.bf16.vlgmr.msra.gmra.mxu0 %v35_v38  ;;  %v2142_v58 = vld [vmem:[%s2792_s1 + $0x198] sm:$0xff]  ;;  %v2141_v62 = vld [vmem:[%s2792_s1 + $0x190] sm:$0xff]  ;;  %v2124_v0 = vld [vmem:[%s2792_s1 + $0x108] sm:$0xff] }
  0x22   :  { %1290 = vmatpush.bf16.msrb.mxu0 %v2130_v32  ;;  %1259 = vmatmul.bf16.vlgmr.msra.gmra.mxu1 %v36_v43  ;;  %v2150_v59 = vld [vmem:[%s2792_s1 + $0x1d8] sm:$0xff]  ;;  %v2149_v63 = vld [vmem:[%s2792_s1 + $0x1d0] sm:$0xff]  ;;  %v2132_v1 = vld [vmem:[%s2792_s1 + $0x148] sm:$0xff] }
  0x23   :  { %1303 = vmatpush.bf16.msrb.mxu1 %v2138_v34  ;;  %1272 = vmatmul.bf16.vlgmr.msra.gmra.mxu2 %v37_v40  ;;  %v2140_v2 = vld [vmem:[%s2792_s1 + $0x188] sm:$0xff]  ;;  %v2123_v4 = vld [vmem:[%s2792_s1 + $0x100] sm:$0xff]  ;;  %v2162_v7 = vld [vmem:[%s2792_s1 + $0x238] sm:$0xff] }
  0x24   :  { %1316 = vmatpush.bf16.msrb.mxu2 %v2146_v35  ;;  %1285 = vmatmul.bf16.vlgmr.msra.gmra.mxu3 %v38_v46  ;;  %v2148_v3 = vld [vmem:[%s2792_s1 + $0x1c8] sm:$0xff]  ;;  %v2131_v5 = vld [vmem:[%s2792_s1 + $0x140] sm:$0xff]  ;;  %v22_v8 = vld [vmem:[%s2791_s0 + $0x30] sm:$0xff] }
  0x25   :  { %1329 = vmatpush.bf16.msrb.mxu3 %v2154_v39  ;;  %v2139_v6 = vld [vmem:[%s2792_s1 + $0x180] sm:$0xff]  ;;  %v2170_v9 = vld [vmem:[%s2792_s1 + $0x278] sm:$0xff]  ;;  %v21_v11 = vld [vmem:[%s2791_s0 + $0x28] sm:$0xff]  ;;  %v41_v15 = vpack.c.bf16 %v22_v8, %v22_v8 }
  0x26   :  { %1291 = vmatpush.bf16.msrb.mxu0 %v2129_v42  ;;  %v20_v10 = vld [vmem:[%s2791_s0 + $0x20] sm:$0xff]  ;;  %v2178_v12 = vld [vmem:[%s2792_s1 + $0x2b8] sm:$0xff]  ;;  %v40_v18 = vpack.c.bf16 %v21_v11, %v21_v11  ;;  %v2161_v19 = vld [vmem:[%s2792_s1 + $0x230] sm:$0xff] }
  0x27   :  { %1304 = vmatpush.bf16.msrb.mxu1 %v2137_v44  ;;  %v2147_v13 = vld [vmem:[%s2792_s1 + $0x1c0] sm:$0xff]  ;;  %v2186_v14 = vld [vmem:[%s2792_s1 + $0x2f8] sm:$0xff]  ;;  %v39_v17 = vpack.c.bf16 %v20_v10, %v20_v10  ;;  %v2169_v20 = vld [vmem:[%s2792_s1 + $0x270] sm:$0xff] }
  0x28   :  { %1317 = vmatpush.bf16.msrb.mxu2 %v2145_v45  ;;  %v23_v16 = vld [vmem:[%s2791_s0 + $0x38] sm:$0xff]  ;;  %v2177_v21 = vld [vmem:[%s2792_s1 + $0x2b0] sm:$0xff]  ;;  %v2160_v24 = vld [vmem:[%s2792_s1 + $0x228] sm:$0xff] }
  0x29   :  { %1330 = vmatpush.bf16.msrb.mxu3 %v2153_v47  ;;  %v42_v22 = vpack.c.bf16 %v23_v16, %v23_v16  ;;  %v2185_v23 = vld [vmem:[%s2792_s1 + $0x2f0] sm:$0xff]  ;;  %v2168_v25 = vld [vmem:[%s2792_s1 + $0x268] sm:$0xff]  ;;  %v2159_v28 = vld [vmem:[%s2792_s1 + $0x220] sm:$0xff] }
  0x2a   :  { %1292 = vmatpush.bf16.msrb.mxu0 %v2128_v48  ;;  %v2176_v26 = vld [vmem:[%s2792_s1 + $0x2a8] sm:$0xff]  ;;  %v2167_v29 = vld [vmem:[%s2792_s1 + $0x260] sm:$0xff]  ;;  %v2158_v32 = vld [vmem:[%s2792_s1 + $0x218] sm:$0xff] }
  0x2b   :  { %1305 = vmatpush.bf16.msrb.mxu1 %v2136_v49  ;;  %v2184_v27 = vld [vmem:[%s2792_s1 + $0x2e8] sm:$0xff]  ;;  %v2175_v30 = vld [vmem:[%s2792_s1 + $0x2a0] sm:$0xff]  ;;  %v2166_v33 = vld [vmem:[%s2792_s1 + $0x258] sm:$0xff] }
  0x2c   :  { %1318 = vmatpush.bf16.msrb.mxu2 %v2144_v50  ;;  %v2183_v31 = vld [vmem:[%s2792_s1 + $0x2e0] sm:$0xff]  ;;  %v2174_v34 = vld [vmem:[%s2792_s1 + $0x298] sm:$0xff]  ;;  %v2157_v36 = vld [vmem:[%s2792_s1 + $0x210] sm:$0xff] }
  0x2d   :  { %1331 = vmatpush.bf16.msrb.mxu3 %v2152_v51  ;;  %v2182_v35 = vld [vmem:[%s2792_s1 + $0x2d8] sm:$0xff]  ;;  %v2165_v37 = vld [vmem:[%s2792_s1 + $0x250] sm:$0xff]  ;;  %v2156_v40 = vld [vmem:[%s2792_s1 + $0x208] sm:$0xff] }
  0x2e   :  { %1293 = vmatpush.bf16.msrb.mxu0 %v2127_v52  ;;  %v2173_v38 = vld [vmem:[%s2792_s1 + $0x290] sm:$0xff]  ;;  %v2164_v41 = vld [vmem:[%s2792_s1 + $0x248] sm:$0xff]  ;;  %v2155_v44 = vld [vmem:[%s2792_s1 + $0x200] sm:$0xff] }
  0x2f   :  { %1306 = vmatpush.bf16.msrb.mxu1 %v2135_v53  ;;  %v2181_v39 = vld [vmem:[%s2792_s1 + $0x2d0] sm:$0xff]  ;;  %v2172_v42 = vld [vmem:[%s2792_s1 + $0x288] sm:$0xff]  ;;  %v2163_v45 = vld [vmem:[%s2792_s1 + $0x240] sm:$0xff] }
  0x30   :  { %1319 = vmatpush.bf16.msrb.mxu2 %v2143_v54  ;;  %v2180_v43 = vld [vmem:[%s2792_s1 + $0x2c8] sm:$0xff]  ;;  %v24_v46 = vld [vmem:[%s2791_s0 + $0x40] sm:$0xff]  ;;  %v2194_v48 = vld [vmem:[%s2792_s1 + $0x338] sm:$0xff] }
  0x31   :  { %1332 = vmatpush.bf16.msrb.mxu3 %v2151_v55  ;;  %v2171_v47 = vld [vmem:[%s2792_s1 + $0x280] sm:$0xff]  ;;  %v26_v49 = vld [vmem:[%s2791_s0 + $0x50] sm:$0xff]  ;;  %v2202_v50 = vld [vmem:[%s2792_s1 + $0x378] sm:$0xff]  ;;  %v43_v54 = vpack.c.bf16 %v24_v46, %v24_v46 }
  0x32   :  { %1294 = vmatpush.bf16.msrb.mxu0 %v2126_v56  ;;  %v2210_v51 = vld [vmem:[%s2792_s1 + $0x3b8] sm:$0xff]  ;;  %v25_v52 = vld [vmem:[%s2791_s0 + $0x48] sm:$0xff]  ;;  %v2179_v53 = vld [vmem:[%s2792_s1 + $0x2c0] sm:$0xff]  ;;  %v45_v56 = vpack.c.bf16 %v26_v49, %v26_v49 }
  0x33   :  { %1307 = vmatpush.bf16.msrb.mxu1 %v2134_v57  ;;  %v27_v55 = vld [vmem:[%s2791_s0 + $0x58] sm:$0xff]  ;;  %v2188_v16 = vld [vmem:[%s2792_s1 + $0x308] sm:$0xff] }
  0x34   :  { %1320 = vmatpush.bf16.msrb.mxu2 %v2142_v58  ;;  %v2218_v57 = vld [vmem:[%s2792_s1 + $0x3f8] sm:$0xff]  ;;  %v44_v58 = vpack.c.bf16 %v25_v52, %v25_v52  ;;  %v2220_v49 = vld [vmem:[%s2792_s1 + $0x408] sm:$0xff]  ;;  %v32_v52 = vld [vmem:[%s2791_s0 + $0x80] sm:$0xff] }
  0x35   :  { %1333 = vmatpush.bf16.msrb.mxu3 %v2150_v59  ;;  %v2193_v59 = vld [vmem:[%s2792_s1 + $0x330] sm:$0xff]  ;;  %v2190_v8 = vld [vmem:[%s2792_s1 + $0x318] sm:$0xff] }
  0x36   :  { %1295 = vmatpush.bf16.msrb.mxu0 %v2125_v60  ;;  %v46_v60 = vpack.c.bf16 %v27_v55, %v27_v55  ;;  %v2206_v10 = vld [vmem:[%s2792_s1 + $0x398] sm:$0xff]  ;;  %v51_v55 = vpack.c.bf16 %v32_v52, %v32_v52 }
  0x37   :  { %1308 = vmatpush.bf16.msrb.mxu1 %v2133_v61  ;;  %v2201_v61 = vld [vmem:[%s2792_s1 + $0x370] sm:$0xff]  ;;  %v2214_v11 = vld [vmem:[%s2792_s1 + $0x3d8] sm:$0xff] }
  0x38   :  { %1321 = vmatpush.bf16.msrb.mxu2 %v2141_v62  ;;  %v2209_v62 = vld [vmem:[%s2792_s1 + $0x3b0] sm:$0xff] }
  0x39   :  { %1334 = vmatpush.bf16.msrb.mxu3 %v2149_v63  ;;  %v2217_v63 = vld [vmem:[%s2792_s1 + $0x3f0] sm:$0xff] }
  0x3a   :  { %1296 = vmatpush.bf16.msrb.mxu0 %v2124_v0  ;;  %v2192_v0 = vld [vmem:[%s2792_s1 + $0x328] sm:$0xff] }
  0x3b   :  { %1309 = vmatpush.bf16.msrb.mxu1 %v2132_v1  ;;  %v2200_v1 = vld [vmem:[%s2792_s1 + $0x368] sm:$0xff] }
  0x3c   :  { %1322 = vmatpush.bf16.msrb.mxu2 %v2140_v2  ;;  %v2208_v2 = vld [vmem:[%s2792_s1 + $0x3a8] sm:$0xff] }
  0x3d   :  { %1335 = vmatpush.bf16.msrb.mxu3 %v2148_v3  ;;  %v2216_v3 = vld [vmem:[%s2792_s1 + $0x3e8] sm:$0xff] }
  0x3e   :  { %1297 = vmatpush.bf16.msrb.mxu0 %v2123_v4  ;;  %v2191_v4 = vld [vmem:[%s2792_s1 + $0x320] sm:$0xff] }
  0x3f   :  { %1310 = vmatpush.bf16.msrb.mxu1 %v2131_v5  ;;  %v2199_v5 = vld [vmem:[%s2792_s1 + $0x360] sm:$0xff] }
  0x40   :  { %1323 = vmatpush.bf16.msrb.mxu2 %v2139_v6  ;;  %v2207_v6 = vld [vmem:[%s2792_s1 + $0x3a0] sm:$0xff] }
  0x41   :  { %1336 = vmatpush.bf16.msrb.mxu3 %v2147_v13  ;;  %1298 = vmatmul.bf16.vlgmr.msrb.gmra.mxu0 %v39_v17  ;;  %v2197_v13 = vld [vmem:[%s2792_s1 + $0x350] sm:$0xff]  ;;  %v2196_v17 = vld [vmem:[%s2792_s1 + $0x348] sm:$0xff] }
  0x42   :  { %1342 = vmatpush.bf16.msra.mxu0 %v2162_v7  ;;  %1311 = vmatmul.bf16.vlgmr.msrb.gmra.mxu1 %v40_v18  ;;  %v2215_v7 = vld [vmem:[%s2792_s1 + $0x3e0] sm:$0xff]  ;;  %v2204_v18 = vld [vmem:[%s2792_s1 + $0x388] sm:$0xff] }
  0x43   :  { %1355 = vmatpush.bf16.msra.mxu1 %v2170_v9  ;;  %1324 = vmatmul.bf16.vlgmr.msrb.gmra.mxu2 %v41_v15  ;;  %v2198_v9 = vld [vmem:[%s2792_s1 + $0x358] sm:$0xff]  ;;  %v2213_v15 = vld [vmem:[%s2792_s1 + $0x3d0] sm:$0xff] }
  0x44   :  { %1368 = vmatpush.bf16.msra.mxu2 %v2178_v12  ;;  %1337 = vmatmul.bf16.vlgmr.msrb.gmra.mxu3 %v42_v22  ;;  %v2189_v12 = vld [vmem:[%s2792_s1 + $0x310] sm:$0xff]  ;;  %v2195_v22 = vld [vmem:[%s2792_s1 + $0x340] sm:$0xff] }
  0x45   :  { %1381 = vmatpush.bf16.msra.mxu3 %v2186_v14  ;;  %v2205_v14 = vld [vmem:[%s2792_s1 + $0x390] sm:$0xff] }
  0x46   :  { %1343 = vmatpush.bf16.msra.mxu0 %v2161_v19  ;;  %v2212_v19 = vld [vmem:[%s2792_s1 + $0x3c8] sm:$0xff] }
  0x47   :  { %1356 = vmatpush.bf16.msra.mxu1 %v2169_v20  ;;  %v2187_v20 = vld [vmem:[%s2792_s1 + $0x300] sm:$0xff] }
  0x48   :  { %1369 = vmatpush.bf16.msra.mxu2 %v2177_v21  ;;  %v28_v21 = vld [vmem:[%s2791_s0 + $0x60] sm:$0xff] }
  0x49   :  { %1382 = vmatpush.bf16.msra.mxu3 %v2185_v23  ;;  %v2226_v23 = vld [vmem:[%s2792_s1 + $0x438] sm:$0xff] }
  0x4a   :  { %1344 = vmatpush.bf16.msra.mxu0 %v2160_v24  ;;  %v29_v24 = vld [vmem:[%s2791_s0 + $0x68] sm:$0xff] }
  0x4b   :  { %1357 = vmatpush.bf16.msra.mxu1 %v2168_v25  ;;  %v2203_v25 = vld [vmem:[%s2792_s1 + $0x380] sm:$0xff] }
  0x4c   :  { %1370 = vmatpush.bf16.msra.mxu2 %v2176_v26  ;;  %v2234_v26 = vld [vmem:[%s2792_s1 + $0x478] sm:$0xff] }
  0x4d   :  { %1383 = vmatpush.bf16.msra.mxu3 %v2184_v27  ;;  %v30_v27 = vld [vmem:[%s2791_s0 + $0x70] sm:$0xff] }
  0x4e   :  { %1345 = vmatpush.bf16.msra.mxu0 %v2159_v28  ;;  %v2211_v28 = vld [vmem:[%s2792_s1 + $0x3c0] sm:$0xff] }
  0x4f   :  { %1358 = vmatpush.bf16.msra.mxu1 %v2167_v29  ;;  %v47_v29 = vpack.c.bf16 %v28_v21, %v28_v21 }
  0x50   :  { %1371 = vmatpush.bf16.msra.mxu2 %v2175_v30  ;;  %v31_v30 = vld [vmem:[%s2791_s0 + $0x78] sm:$0xff] }
  0x51   :  { %1384 = vmatpush.bf16.msra.mxu3 %v2183_v31  ;;  %v48_v31 = vpack.c.bf16 %v29_v24, %v29_v24 }
  0x52   :  { %1346 = vmatpush.bf16.msra.mxu0 %v2158_v32  ;;  %v2237_v32 = vld [vmem:[%s2792_s1 + $0x490] sm:$0xff] }
  0x53   :  { %1359 = vmatpush.bf16.msra.mxu1 %v2166_v33  ;;  %v49_v33 = vpack.c.bf16 %v30_v27, %v30_v27 }
  0x54   :  { %1372 = vmatpush.bf16.msra.mxu2 %v2174_v34  ;;  %v2225_v34 = vld [vmem:[%s2792_s1 + $0x430] sm:$0xff] }
  0x55   :  { %1385 = vmatpush.bf16.msra.mxu3 %v2182_v35  ;;  %v50_v35 = vpack.c.bf16 %v31_v30, %v31_v30 }
  0x56   :  { %1347 = vmatpush.bf16.msra.mxu0 %v2157_v36  ;;  %v2233_v36 = vld [vmem:[%s2792_s1 + $0x470] sm:$0xff] }
  0x57   :  { %1360 = vmatpush.bf16.msra.mxu1 %v2165_v37  ;;  %v2236_v37 = vld [vmem:[%s2792_s1 + $0x488] sm:$0xff] }
  0x58   :  { %1373 = vmatpush.bf16.msra.mxu2 %v2173_v38  ;;  %v2224_v38 = vld [vmem:[%s2792_s1 + $0x428] sm:$0xff] }
  0x59   :  { %1386 = vmatpush.bf16.msra.mxu3 %v2181_v39  ;;  %v2232_v39 = vld [vmem:[%s2792_s1 + $0x468] sm:$0xff] }
  0x5a   :  { %1348 = vmatpush.bf16.msra.mxu0 %v2156_v40  ;;  %v2235_v40 = vld [vmem:[%s2792_s1 + $0x480] sm:$0xff] }
  0x5b   :  { %1361 = vmatpush.bf16.msra.mxu1 %v2164_v41  ;;  %v2223_v41 = vld [vmem:[%s2792_s1 + $0x420] sm:$0xff] }
  0x5c   :  { %1374 = vmatpush.bf16.msra.mxu2 %v2172_v42  ;;  %v2231_v42 = vld [vmem:[%s2792_s1 + $0x460] sm:$0xff] }
  0x5d   :  { %1387 = vmatpush.bf16.msra.mxu3 %v2180_v43  ;;  %v2222_v43 = vld [vmem:[%s2792_s1 + $0x418] sm:$0xff] }
  0x5e   :  { %1349 = vmatpush.bf16.msra.mxu0 %v2155_v44  ;;  %v2230_v44 = vld [vmem:[%s2792_s1 + $0x458] sm:$0xff] }
  0x5f   :  { %1362 = vmatpush.bf16.msra.mxu1 %v2163_v45  ;;  %v34_v45 = vld [vmem:[%s2791_s0 + $0x90] sm:$0xff] }
  0x60   :  { %1375 = vmatpush.bf16.msra.mxu2 %v2171_v47  ;;  %v53_v46 = vpack.c.bf16 %v34_v45, %v34_v45  ;;  %v2221_v47 = vld [vmem:[%s2792_s1 + $0x410] sm:$0xff] }
  0x61   :  { %1388 = vmatpush.bf16.msra.mxu3 %v2179_v53  ;;  %1350 = vmatmul.bf16.vlgmr.msra.gmra.mxu0 %v43_v54  ;;  %v2227_v53 = vld [vmem:[%s2792_s1 + $0x440] sm:$0xff]  ;;  %v33_v54 = vld [vmem:[%s2791_s0 + $0x88] sm:$0xff]  ;;  %s2266_s0 = smov [#allocation2]  }
  0x62   :  { %1394 = vmatpush.bf16.msrb.mxu0 %v2194_v48  ;;  %1363 = vmatmul.bf16.vlgmr.msra.gmra.mxu1 %v44_v58  ;;  %v2229_v48 = vld [vmem:[%s2792_s1 + $0x450] sm:$0xff] }
  0x63   :  { %1407 = vmatpush.bf16.msrb.mxu1 %v2202_v50  ;;  %1376 = vmatmul.bf16.vlgmr.msra.gmra.mxu2 %v45_v56  ;;  %v2228_v50 = vld [vmem:[%s2792_s1 + $0x448] sm:$0xff]  ;;  %v52_v56 = vpack.c.bf16 %v33_v54, %v33_v54 }
  0x64   :  { %1420 = vmatpush.bf16.msrb.mxu2 %v2210_v51  ;;  %1389 = vmatmul.bf16.vlgmr.msra.gmra.mxu3 %v46_v60  ;;  %v2219_v51 = vld [vmem:[%s2792_s1 + $0x400] sm:$0xff]  ;;  %s1491_s1 = sshll.u32 %s2266_s0, 4  ;;  %s1492_s1 = int_to_ptr.vmem [resolvable:$true] %s1491_s1 }
  0x65   :  { %1433 = vmatpush.bf16.msrb.mxu3 %v2218_v57  ;;  %v2239_v57 = vld [vmem:[%s2793_s2] ss:$0 sm:$0xff] }
  0x66   :  { %1395 = vmatpush.bf16.msrb.mxu0 %v2193_v59 }
  0x67   :  { %1408 = vmatpush.bf16.msrb.mxu1 %v2201_v61 }
  0x68   :  { %1421 = vmatpush.bf16.msrb.mxu2 %v2209_v62 }
  0x69   :  { %1434 = vmatpush.bf16.msrb.mxu3 %v2217_v63 }
  0x6a   :  { %1396 = vmatpush.bf16.msrb.mxu0 %v2192_v0 }
  0x6b   :  { %1409 = vmatpush.bf16.msrb.mxu1 %v2200_v1 }
  0x6c   :  { %1422 = vmatpush.bf16.msrb.mxu2 %v2208_v2 }
  0x6d   :  { %1435 = vmatpush.bf16.msrb.mxu3 %v2216_v3 }
  0x6e   :  { %1397 = vmatpush.bf16.msrb.mxu0 %v2191_v4 }
  0x6f   :  { %1410 = vmatpush.bf16.msrb.mxu1 %v2199_v5 }
  0x70   :  { %1423 = vmatpush.bf16.msrb.mxu2 %v2207_v6 }
  0x71   :  { %1436 = vmatpush.bf16.msrb.mxu3 %v2215_v7 }
  0x72   :  { %1398 = vmatpush.bf16.msrb.mxu0 %v2190_v8 }
  0x73   :  { %1411 = vmatpush.bf16.msrb.mxu1 %v2198_v9 }
  0x74   :  { %1424 = vmatpush.bf16.msrb.mxu2 %v2206_v10 }
  0x75   :  { %1437 = vmatpush.bf16.msrb.mxu3 %v2214_v11 }
  0x76   :  { %1399 = vmatpush.bf16.msrb.mxu0 %v2189_v12 }
  0x77   :  { %1412 = vmatpush.bf16.msrb.mxu1 %v2197_v13 }
  0x78   :  { %1425 = vmatpush.bf16.msrb.mxu2 %v2205_v14 }
  0x79   :  { %1438 = vmatpush.bf16.msrb.mxu3 %v2213_v15 }
  0x7a   :  { %1400 = vmatpush.bf16.msrb.mxu0 %v2188_v16 }
  0x7b   :  { %1413 = vmatpush.bf16.msrb.mxu1 %v2196_v17 }
  0x7c   :  { %1426 = vmatpush.bf16.msrb.mxu2 %v2204_v18 }
  0x7d   :  { %1439 = vmatpush.bf16.msrb.mxu3 %v2212_v19 }
  0x7e   :  { %1401 = vmatpush.bf16.msrb.mxu0 %v2187_v20 }
  0x7f   :  { %1414 = vmatpush.bf16.msrb.mxu1 %v2195_v22 }
  0x80   :  { %1427 = vmatpush.bf16.msrb.mxu2 %v2203_v25 }
  0x81   :  { %1440 = vmatpush.bf16.msrb.mxu3 %v2211_v28  ;;  %1402 = vmatmul.bf16.vlgmr.msrb.gmra.mxu0 %v47_v29 }
  0x82   :  { %1446 = vmatpush.bf16.msra.mxu0 %v2226_v23  ;;  %1415 = vmatmul.bf16.vlgmr.msrb.gmra.mxu1 %v48_v31 }
  0x83   :  { %1459 = vmatpush.bf16.msra.mxu1 %v2234_v26  ;;  %1428 = vmatmul.bf16.vlgmr.msrb.gmra.mxu2 %v49_v33 }
  0x84   :  { %1477 = vmatpush.bf16.msra.mxu2 %v2237_v32  ;;  %1441 = vmatmul.bf16.vlgmr.msrb.gmra.mxu3 %v50_v35 }
  0x86   :  { %1447 = vmatpush.bf16.msra.mxu0 %v2225_v34 }
  0x87   :  { %1460 = vmatpush.bf16.msra.mxu1 %v2233_v36 }
  0x88   :  { %1478 = vmatpush.bf16.msra.mxu2 %v2236_v37 }
  0x8a   :  { %1448 = vmatpush.bf16.msra.mxu0 %v2224_v38 }
  0x8b   :  { %1461 = vmatpush.bf16.msra.mxu1 %v2232_v39 }
  0x8c   :  { %1479 = vmatpush.bf16.msra.mxu2 %v2235_v40 }
  0x8e   :  { %1449 = vmatpush.bf16.msra.mxu0 %v2223_v41 }
  0x8f   :  { %1462 = vmatpush.bf16.msra.mxu1 %v2231_v42 }
  0x92   :  { %1450 = vmatpush.bf16.msra.mxu0 %v2222_v43 }
  0x93   :  { %1463 = vmatpush.bf16.msra.mxu1 %v2230_v44  ;;  %2090 = vmatmul.msk.bf16.vlgmr.msra.gmra.mxu2 %vm1234_vm0, %v53_v46 }
  0x96   :  { %1451 = vmatpush.bf16.msra.mxu0 %v2221_v47 }
  0x97   :  { %1464 = vmatpush.bf16.msra.mxu1 %v2229_v48 }
  0x9a   :  { %1452 = vmatpush.bf16.msra.mxu0 %v2220_v49 }
  0x9b   :  { %1465 = vmatpush.bf16.msra.mxu1 %v2228_v50 }
  0x9e   :  { %1453 = vmatpush.bf16.msra.mxu0 %v2219_v51  ;;  %v1247_v58 = vpop.f32.mrf.mxu0 }
  0x9f   :  { %1466 = vmatpush.bf16.msra.mxu1 %v2227_v53  ;;  %v1248_v59 = vadd.f32 %v2239_v57, %v1247_v58  ;;  %v1260_v60 = vpop.f32.mrf.mxu1 }
  0xa1   :  { %1454 = vmatmul.bf16.vlgmr.msra.gmra.mxu0 %v51_v55  ;;  %v1261_v61 = vadd.f32 %v1260_v60, %v1248_v59 }
  0xa2   :  { %1467 = vmatmul.bf16.vlgmr.msra.gmra.mxu1 %v52_v56 }
  0xa6   :  { %v1273_v62 = vpop.f32.mrf.mxu2  ;;  %v1249_v0 = vpop.f32.mrf.mxu0 }
  0xa7   :  { %v1274_v63 = vadd.f32 %v1273_v62, %v1261_v61  ;;  %v1286_v1 = vpop.f32.mrf.mxu3  ;;  %v1262_v2 = vpop.f32.mrf.mxu1 }
  0xa9   :  { %v1287_v3 = vadd.f32 %v1286_v1, %v1274_v63 }
  0xae   :  { %v1275_v4 = vpop.f32.mrf.mxu2 }
  0xaf   :  { %v1288_v5 = vpop.f32.mrf.mxu3 }
  0xbe   :  { %v1299_v6 = vpop.f32.mrf.mxu0 }
  0xbf   :  { %v1312_v7 = vpop.f32.mrf.mxu1  ;;  %v1300_v22 = vadd.f32 %v1299_v6, %v1287_v3 }
  0xc1   :  { %v1313_v23 = vadd.f32 %v1312_v7, %v1300_v22 }
  0xc6   :  { %v1325_v8 = vpop.f32.mrf.mxu2  ;;  %v1301_v10 = vpop.f32.mrf.mxu0 }
  0xc7   :  { %v1338_v9 = vpop.f32.mrf.mxu3  ;;  %v1314_v11 = vpop.f32.mrf.mxu1  ;;  %v1326_v24 = vadd.f32 %v1325_v8, %v1313_v23 }
  0xc9   :  { %v1339_v27 = vadd.f32 %v1338_v9, %v1326_v24 }
  0xce   :  { %v1327_v12 = vpop.f32.mrf.mxu2 }
  0xcf   :  { %v1340_v13 = vpop.f32.mrf.mxu3 }
  0xde   :  { %v1351_v14 = vpop.f32.mrf.mxu0 }
  0xdf   :  { %v1364_v15 = vpop.f32.mrf.mxu1  ;;  %v1352_v28 = vadd.f32 %v1351_v14, %v1339_v27 }
  0xe1   :  { %v1365_v33 = vadd.f32 %v1364_v15, %v1352_v28 }
  0xe6   :  { %v1377_v16 = vpop.f32.mrf.mxu2  ;;  %v1353_v17 = vpop.f32.mrf.mxu0 }
  0xe7   :  { %v1390_v18 = vpop.f32.mrf.mxu3  ;;  %v1366_v19 = vpop.f32.mrf.mxu1  ;;  %v1378_v34 = vadd.f32 %v1377_v16, %v1365_v33 }
  0xe9   :  { %v1391_v35 = vadd.f32 %v1390_v18, %v1378_v34 }
  0xee   :  { %v1379_v20 = vpop.f32.mrf.mxu2 }
  0xef   :  { %v1392_v21 = vpop.f32.mrf.mxu3 }
  0xfe   :  { %v1403_v25 = vpop.f32.mrf.mxu0 }
  0xff   :  { %v1416_v26 = vpop.f32.mrf.mxu1  ;;  %v1404_v38 = vadd.f32 %v1403_v25, %v1391_v35 }
 0x101   :  { %v1417_v39 = vadd.f32 %v1416_v26, %v1404_v38 }
 0x106   :  { %v1429_v29 = vpop.f32.mrf.mxu2  ;;  %v1405_v30 = vpop.f32.mrf.mxu0 }
 0x107   :  { %v1442_v31 = vpop.f32.mrf.mxu3  ;;  %v1418_v32 = vpop.f32.mrf.mxu1  ;;  %v1430_v40 = vadd.f32 %v1429_v29, %v1417_v39 }
 0x109   :  { %v1443_v42 = vadd.f32 %v1442_v31, %v1430_v40 }
 0x10e   :  { %v1431_v36 = vpop.f32.mrf.mxu2 }
 0x10f   :  { %v1444_v37 = vpop.f32.mrf.mxu3 }
 0x116   :  { %v1481_v41 = vpop.f32.mrf.mxu2 }
 0x11e   :  { %v1455_v43 = vpop.f32.mrf.mxu0  ;;  %v1483_v47 = vpop.f32.mrf.mxu2 }
 0x11f   :  { %v1456_v44 = vadd.f32 %v1455_v43, %v1443_v42  ;;  %v1468_v45 = vpop.f32.mrf.mxu1 }
 0x121   :  { %v1469_v46 = vadd.f32 %v1468_v45, %v1456_v44 }
 0x123   :  { %v1482_v48 = vadd.f32 %v1481_v41, %v1469_v46 }
 0x125   :  { %1485 = vst [vmem:[#allocation2] sm:$0xff] %v1482_v48 }
 0x126   :  { %v1457_v49 = vpop.f32.mrf.mxu0  ;;  %1496 = dma.vmem_to_hbm [thread:$0]  %s1492_s1, 128, %s1494_s23, [#allocation3]  }
 0x127   :  { %v1470_v50 = vpop.f32.mrf.mxu1 }
 0x128   :  { %2264 = dma.done.wait [#allocation3], 128  }
 0x129   :  { %2265 = vsyncadd [#allocation3], 4294967168 }
 0x12a   :  { %1501 = vsyncpa [#allocation3], 1 }

</bundles_post_ra>
